<compile_context>
chip_gen: v5e
topology: v5e:2x2
jax: 0.10.0
libtpu: 0.0.40
codegen_flags: <defaults>
</compile_context>

<pallas_src>
import functools
import math

import jax
import jax.numpy as jnp
from jax import lax
from jax.experimental import pallas as pl
from jax.experimental.pallas import tpu as pltpu

# Raise the scoped VMEM limit (v5e default 16 MiB, v6e/v7x 32 MiB); 64 MiB stays within
# physical VMEM on v5e/v6e (128 MiB) and v7x (64 MiB).
_VMEM_LIMIT_BYTES = 64 * 1024 * 1024


def _pick_tile(n, candidates=(512, 256, 128, 64, 32, 16, 8)):
    """Largest candidate tile dividing n, else n itself (callers pad n to a mult. of 8)."""
    for t in candidates:
        if t <= n and n % t == 0:
            return t
    return n


def _pick_row_tile(S, D, itemsize, budget=4 * 1024 * 1024):
    """Row tile for the projection kernels: as large as possible while the (rows, D)
    activation block stays under ~4 MiB (keeps double-buffering comfortable on v7x)."""
    max_rows = max(8, budget // max(1, D * itemsize))
    for t in (1024, 512, 256, 128, 64, 32, 16, 8):
        if t <= max_rows and t <= S and S % t == 0:
            return t
    return 8 if S % 8 == 0 else S


def _pad_rows_to_multiple(x, m):
    """Pad axis 1 (sequence) with zeros up to a multiple of m."""
    pad = (-x.shape[1]) % m
    if pad == 0:
        return x
    return jnp.pad(x, ((0, 0), (0, pad), (0, 0)))


# ---------------------------------------------------------------------------
# Lane-dense projection:  out[b, s, :] = x[b, s, :] @ W     (W already (D_in, N))
# One full-width MXU matmul per (batch, row-tile, N-tile) grid step; all heads at once.
# ---------------------------------------------------------------------------

def _proj_kernel(x_ref, w_ref, o_ref):
    # x: (1, tq, D_in)   w: (D_in, tn)   o: (1, tq, tn)   -- single lane-dense write
    o_ref[0] = lax.dot_general(
        x_ref[0], w_ref[...], (((1,), (0,)), ((), ())),
        preferred_element_type=jnp.float32).astype(o_ref.dtype)


def _project(x, w):
    """x: (B, S, D_in), w: (D_in, N)  ->  (B, S, N)."""
    B, S, D_in = x.shape
    N = w.shape[1]
    tq = _pick_row_tile(S, D_in, jnp.dtype(x.dtype).itemsize)
    tn = _pick_tile(N, (512, 256, 128))           # lane-dense (>=128) or full N
    return pl.pallas_call(
        _proj_kernel,
        out_shape=jax.ShapeDtypeStruct((B, S, N), x.dtype),
        grid_spec=pltpu.PrefetchScalarGridSpec(
            num_scalar_prefetch=0,
            grid=(B, S // tq, N // tn),           # N-tile innermost: x tile stays resident
            in_specs=[
                pl.BlockSpec((1, tq, D_in), lambda b, i, j: (b, i, 0)),
                pl.BlockSpec((D_in, tn), lambda b, i, j: (0, j)),
            ],
            out_specs=pl.BlockSpec((1, tq, tn), lambda b, i, j: (b, i, j)),
        ),
        compiler_params=pltpu.CompilerParams(
            dimension_semantics=("parallel", "parallel", "parallel"),
            vmem_limit_bytes=_VMEM_LIMIT_BYTES),
    )(x, w)


def _split_heads(y, num_heads, d_k):
    """(B, S, D) -> (B, H, S, d_k).  One XLA layout pass; keeps every kernel block
    legal (minor block dim == full d_k) and every kernel matmul lane-dense."""
    B, S, D = y.shape
    return jnp.transpose(y.reshape(B, S, num_heads, d_k), (0, 2, 1, 3))


# ---------------------------------------------------------------------------
# Flash attention: online softmax over KV tiles.
# Only valid (qi, ki) tile pairs are enumerated (scalar prefetch) -> skipped causal
# tiles cost zero grid steps; mask applied only on diagonal / last-key tiles.
# ---------------------------------------------------------------------------

def _flash_kernel(qi_ref, ki_ref, last_ref, q_ref, k_ref, v_ref, o_ref,
                  m_sc, l_sc, acc_sc, *, tq, tk, n_k, s_k_valid, mask_future):
    t = pl.program_id(2)
    qi = qi_ref[t]
    ki = ki_ref[t]

    @pl.when(ki == 0)
    def _init():
        m_sc[...] = jnp.full(m_sc.shape, -jnp.inf, jnp.float32)
        l_sc[...] = jnp.zeros(l_sc.shape, jnp.float32)
        acc_sc[...] = jnp.zeros(acc_sc.shape, jnp.float32)

    kpad = (n_k * tk) != s_k_valid        # static: padded key positions exist?

    def _accumulate(apply_mask):
        q = q_ref[0, 0]                   # (tq, d_k); 1/sqrt(d_k) folded into Wq
        k = k_ref[0, 0]                   # (tk, d_k)
        v = v_ref[0, 0]                   # (tk, d_k)
        # scores = q @ k^T without materializing a transpose (contract the d_k axes)
        s = lax.dot_general(q, k, (((1,), (1,)), ((), ())),
                            preferred_element_type=jnp.float32)      # (tq, tk) fp32
        if apply_mask:
            row = qi * tq + lax.broadcasted_iota(jnp.int32, (tq, tk), 0)
            col = ki * tk + lax.broadcasted_iota(jnp.int32, (tq, tk), 1)
            bad = None
            if mask_future:
                # Absolute-position causal convention (matches the reference module).
                bad = col > row
            if kpad:
                pad_bad = col >= s_k_valid
                bad = pad_bad if bad is None else jnp.logical_or(bad, pad_bad)
            s = jnp.where(bad, jnp.float32(-1e9), s)
        m_prev = m_sc[...]
        m_new = jnp.maximum(m_prev, jnp.max(s, axis=-1, keepdims=True))
        alpha = jnp.exp(m_prev - m_new)
        p = jnp.exp(s - m_new)
        l_sc[...] = alpha * l_sc[...] + jnp.sum(p, axis=-1, keepdims=True)
        acc_sc[...] = alpha * acc_sc[...] + lax.dot_general(
            p.astype(v.dtype), v, (((1,), (0,)), ((), ())),
            preferred_element_type=jnp.float32)
        m_sc[...] = m_new

    if mask_future or kpad:
        conds = []
        if mask_future:
            conds.append(ki * tk + (tk - 1) > qi * tq)   # tile crosses the diagonal
        if kpad:
            conds.append(ki == n_k - 1)                  # tile contains padded keys
        needs_mask = conds[0] if len(conds) == 1 else jnp.logical_or(*conds)
        pl.when(needs_mask)(lambda: _accumulate(True))
        pl.when(jnp.logical_not(needs_mask))(lambda: _accumulate(False))
    else:
        _accumulate(False)

    @pl.when(last_ref[t] == 1)
    def _finalize():
        # Exact divide (once per q tile) instead of the approximate reciprocal.
        o_ref[0, 0] = (acc_sc[...] / l_sc[...]).astype(o_ref.dtype)


def _flash_attention(qh, kh, vh, *, s_k_valid, mask_future):
    """qh: (B, H, Sq, d_k), kh/vh: (B, H, Sk, d_k)  ->  ctx: (B, H, Sq, d_k)."""
    B, H, S_qp, d_k = qh.shape
    S_kp = kh.shape[2]
    tq = _pick_tile(S_qp)
    tk = _pick_tile(S_kp)
    n_q, n_k = S_qp // tq, S_kp // tk

    # Enumerate only the (qi, ki) tile pairs that need work (scalar prefetch schedule).
    qi_l, ki_l, last_l = [], [], []
    for qi in range(n_q):
        if mask_future:
            k_hi = min(n_k, (qi * tq + tq - 1) // tk + 1)
        else:
            k_hi = n_k
        for ki in range(k_hi):
            qi_l.append(qi)
            ki_l.append(ki)
            last_l.append(1 if ki == k_hi - 1 else 0)
    qi_map = jnp.asarray(qi_l, jnp.int32)
    ki_map = jnp.asarray(ki_l, jnp.int32)
    last_map = jnp.asarray(last_l, jnp.int32)
    n_pairs = len(qi_l)

    kernel = functools.partial(_flash_kernel, tq=tq, tk=tk, n_k=n_k,
                               s_k_valid=s_k_valid, mask_future=mask_future)

    q_index = lambda b, h, t, qi_m, ki_m, last_m: (b, h, qi_m[t], 0)
    kv_index = lambda b, h, t, qi_m, ki_m, last_m: (b, h, ki_m[t], 0)

    return pl.pallas_call(
        kernel,
        out_shape=jax.ShapeDtypeStruct((B, H, S_qp, d_k), qh.dtype),
        grid_spec=pltpu.PrefetchScalarGridSpec(
            num_scalar_prefetch=3,
            grid=(B, H, n_pairs),
            in_specs=[
                pl.BlockSpec((1, 1, tq, d_k), q_index),
                pl.BlockSpec((1, 1, tk, d_k), kv_index),
                pl.BlockSpec((1, 1, tk, d_k), kv_index),
            ],
            out_specs=pl.BlockSpec((1, 1, tq, d_k), q_index),
            scratch_shapes=[
                pltpu.VMEM((tq, 1), jnp.float32),     # running row max
                pltpu.VMEM((tq, 1), jnp.float32),     # running row sum
                pltpu.VMEM((tq, d_k), jnp.float32),   # output accumulator
            ],
        ),
        compiler_params=pltpu.CompilerParams(
            dimension_semantics=("parallel", "parallel", "arbitrary"),
            vmem_limit_bytes=_VMEM_LIMIT_BYTES),
    )(qi_map, ki_map, last_map, qh, kh, vh)


# ---------------------------------------------------------------------------
# Public wrapper (forward pass of the PyTorch module, mask=None path)
# ---------------------------------------------------------------------------

def multi_head_attention(q, k, v, wq, wk, wv, wo, *, num_heads, mask_future=True):
    """q, k, v: (B, S, d_model). Weights use PyTorch nn.Linear layout [out, in], no bias.

    Note: the fused-QKV fast path is gated on object identity (q is k is v); distinct
    objects take the generic 3-projection path with identical numerics.
    """
    B, S_q, D = q.shape
    S_k = k.shape[1]
    if D % num_heads != 0:
        raise ValueError("d_model must be divisible by num_heads")
    d_k = D // num_heads
    scale = 1.0 / math.sqrt(d_k)
    dt = q.dtype

    # One-time (trace-time) weight re-layout; 1/sqrt(d_k) folded into Wq (free).
    wq_t = (wq.T * scale).astype(dt)      # (D_in, D_out)
    wk_t = wk.T.astype(dt)
    wv_t = wv.T.astype(dt)
    wo_t = wo.T.astype(dt)

    self_attn = (q is k) and (k is v)
    qp = _pad_rows_to_multiple(q, 8)      # sequence padded to a multiple of 8 (sublane)
    if self_attn:
        kp = vp = qp
    else:
        kp = _pad_rows_to_multiple(k, 8)
        vp = _pad_rows_to_multiple(v, 8)

    if self_attn:
        # Fused QKV: one lane-dense (tq, D) @ (D, 3D) matmul per row tile.
        w_qkv = jnp.concatenate([wq_t, wk_t, wv_t], axis=1)     # (D, 3D)
        qkv = _project(qp, w_qkv)                                # (B, Sp, 3D)
        q_lin = qkv[:, :, :D]
        k_lin = qkv[:, :, D:2 * D]
        v_lin = qkv[:, :, 2 * D:]
    else:
        q_lin = _project(qp, wq_t)
        k_lin = _project(kp, wk_t)
        v_lin = _project(vp, wv_t)

    qh = _split_heads(q_lin, num_heads, d_k)                     # (B, H, Sqp, d_k)
    kh = _split_heads(k_lin, num_heads, d_k)
    vh = _split_heads(v_lin, num_heads, d_k)

    ctx = _flash_attention(qh, kh, vh, s_k_valid=S_k, mask_future=mask_future)

    # combine_heads: one XLA layout pass, then a single full-K lane-dense matmul.
    S_qp = ctx.shape[2]
    ctx2 = jnp.transpose(ctx, (0, 2, 1, 3)).reshape(B, S_qp, D)
    out = _project(ctx2, wo_t)                                   # (B, Sqp, D)

    # TODO(synk): optional padding `mask` argument (mask=None path only) not implemented.
    return out[:, :S_q, :]


# ---------------------------------------------------------------------------
# Pure-JAX reference (mirrors the PyTorch module) + self-test
# ---------------------------------------------------------------------------

def _reference(q, k, v, wq, wk, wv, wo, num_heads, mask_future=True):
    B, S_q, D = q.shape
    S_k = k.shape[1]
    d_k = D // num_heads

    def split(x, s):
        return x.reshape(B, s, num_heads, d_k).transpose(0, 2, 1, 3)

    qh = split(q @ wq.T, S_q)
    kh = split(k @ wk.T, S_k)
    vh = split(v @ wv.T, S_k)
    scores = jnp.einsum('bhqd,bhkd->bhqk', qh, kh) / math.sqrt(d_k)
    if mask_future:
        causal = jnp.triu(jnp.ones((S_q, S_k)), k=1)
        scores = jnp.where(causal == 1, -1e9, scores)
    attn = jax.nn.softmax(scores, axis=-1)
    ctx = jnp.einsum('bhqk,bhkd->bhqd', attn, vh)
    ctx = ctx.transpose(0, 2, 1, 3).reshape(B, S_q, D)
    return ctx @ wo.T


if __name__ == "__main__":
    B, S, D, H = 2, 8, 32, 4

    key = jax.random.PRNGKey(0)
    kx, kq, kk, kv, k1, k2, k3, k4 = jax.random.split(key, 8)

    bound = 1.0 / math.sqrt(D)
    wq = jax.random.uniform(k1, (D, D), jnp.float32, -bound, bound)
    wk = jax.random.uniform(k2, (D, D), jnp.float32, -bound, bound)
    wv = jax.random.uniform(k3, (D, D), jnp.float32, -bound, bound)
    wo = jax.random.uniform(k4, (D, D), jnp.float32, -bound, bound)

    # 1) Self-attention (fused QKV projection + causal flash attention + single out-proj).
    x = jax.random.normal(kx, (B, S, D), dtype=jnp.float32)
    out_self = jax.block_until_ready(
        multi_head_attention(x, x, x, wq, wk, wv, wo, num_heads=H, mask_future=True))
    ref_self = _reference(x, x, x, wq, wk, wv, wo, H, mask_future=True)
    assert out_self.shape == (B, S, D)
    assert jnp.allclose(out_self, ref_self, atol=2e-3, rtol=2e-3), "self-attn mismatch"

    # 2) Distinct q / k / v (generic projection path).
    q = jax.random.normal(kq, (B, S, D), dtype=jnp.float32)
    k = jax.random.normal(kk, (B, S, D), dtype=jnp.float32)
    v = jax.random.normal(kv, (B, S, D), dtype=jnp.float32)
    out = jax.block_until_ready(
        multi_head_attention(q, k, v, wq, wk, wv, wo, num_heads=H, mask_future=True))
    ref = _reference(q, k, v, wq, wk, wv, wo, H, mask_future=True)
    assert out.shape == (B, S, D)
    assert jnp.allclose(out, ref, atol=2e-3, rtol=2e-3), "cross-attn mismatch"

    # 3) Sequence length not a multiple of 8 (exercises the padding + key-mask path).
    x5 = x[:, :5, :]
    out5 = jax.block_until_ready(
        multi_head_attention(x5, x5, x5, wq, wk, wv, wo, num_heads=H, mask_future=True))
    ref5 = _reference(x5, x5, x5, wq, wk, wv, wo, H, mask_future=True)
    assert out5.shape == (B, 5, D)
    assert jnp.allclose(out5, ref5, atol=2e-3, rtol=2e-3), "ragged-length mismatch"

    print("KERNEL_OK")
</pallas_src>

<mosaic_0001>
module attributes {stable_mosaic.version = 11 : i64} {
  func.func @_proj_kernel(%arg0: i32, %arg1: i32, %arg2: i32, %arg3: memref<1x8x32xf32, #tpu.memory_space<vmem>>, %arg4: memref<32x96xf32, #tpu.memory_space<vmem>>, %arg5: memref<1x8x96xf32, #tpu.memory_space<vmem>>) attributes {dimension_semantics = [#tpu.dimension_semantics<parallel>, #tpu.dimension_semantics<parallel>, #tpu.dimension_semantics<parallel>], iteration_bounds = array<i64: 2, 1, 1>, scalar_prefetch = 0 : i64, scratch_operands = 0 : i64, tpu.core_type = #tpu.core_type<tc>, window_params = [{transform_indices = @transform_0, window_bounds = array<i64: 1, 8, 32>}, {transform_indices = @transform_1, window_bounds = array<i64: 32, 96>}, {transform_indices = @transform_2, window_bounds = array<i64: 1, 8, 96>}]} {
    %c0 = arith.constant 0 : index
    %c0_0 = arith.constant 0 : index
    %c0_1 = arith.constant 0 : index
    %0 = vector.load %arg3[%c0, %c0_0, %c0_1] : memref<1x8x32xf32, #tpu.memory_space<vmem>>, vector<1x8x32xf32>
    %1 = vector.shape_cast %0 : vector<1x8x32xf32> to vector<8x32xf32>
    %c0_2 = arith.constant 0 : index
    %c0_3 = arith.constant 0 : index
    %2 = vector.load %arg4[%c0_2, %c0_3] : memref<32x96xf32, #tpu.memory_space<vmem>>, vector<32x96xf32>
    %cst = arith.constant dense<0.000000e+00> : vector<8x96xf32>
    %3 = tpu.matmul %1, %2, %cst {dimension_numbers = #tpu.dot_dimension_numbers<[1], [0], [0], [1], [0, 0, 1, 1], [], []>} : vector<8x32xf32>, vector<32x96xf32>, vector<8x96xf32> -> vector<8x96xf32>
    %c0_4 = arith.constant 0 : index
    %c0_5 = arith.constant 0 : index
    %c0_6 = arith.constant 0 : index
    %4 = vector.load %arg5[%c0_4, %c0_5, %c0_6] : memref<1x8x96xf32, #tpu.memory_space<vmem>>, vector<1x8x96xf32>
    %5 = vector.shape_cast %4 : vector<1x8x96xf32> to vector<8x96xf32>
    %6 = vector.shape_cast %3 : vector<8x96xf32> to vector<1x8x96xf32>
    tpu.vector_store %arg5[%c0_4, %c0_5, %c0_6], %6 {strides = array<i32>} : memref<1x8x96xf32, #tpu.memory_space<vmem>>, vector<1x8x96xf32>,
    return
  }
  func.func @transform_0(%arg0: i32, %arg1: i32, %arg2: i32) -> (i32, i32, i32) {
    %c0_i32 = arith.constant 0 : i32
    %c0_i32_0 = arith.constant 0 : i32
    return %arg0, %arg1, %c0_i32 : i32, i32, i32
  }
  func.func @transform_1(%arg0: i32, %arg1: i32, %arg2: i32) -> (i32, i32) {
    %c0_i32 = arith.constant 0 : i32
    %c0_i32_0 = arith.constant 0 : i32
    return %c0_i32, %arg2 : i32, i32
  }
  func.func @transform_2(%arg0: i32, %arg1: i32, %arg2: i32) -> (i32, i32, i32) {
    %c0_i32 = arith.constant 0 : i32
    return %arg0, %arg1, %arg2 : i32, i32, i32
  }
}

</mosaic_0001>

<bundles_post_ra>
// kernel: tpu_custom_call.1
= control target key start
LH: loop header
LB: loop body
LE: loop exit
PB: predicated region body
PF: predicated region fallthrough
CT: control target
= control target key end

     0   :  { %7 = vsyncpa [#allocation3], 0  ;;  %s756_s0 = inlined_call_operand.hbm [shape: f32[2,8,32], index: 0, kind: input, shape index: {}]   ;;  %s757_s1 = inlined_call_operand.hbm [shape: f32[32,96], index: 1, kind: input, shape index: {}]   ;;  %s758_s2 = inlined_call_operand.hbm [shape: f32[2,8,96], index: 2, kind: output, shape index: {}]  }
   0x1   :  { %9 = vsyncpa [#allocation3 + $0x1], 0 }
   0x2   :  { %10 = vsyncpa [#allocation6], 0 }
   0x3   :  { %11 = vsyncpa [#allocation4], 0 }
   0x4   :  { %13 = vsyncpa [#allocation4 + $0x1], 0  ;;  %s613_s9 = smov 0   ;;  %s615_s10 = smov 0  }
   0x5   :  { %s617_s11 = smov 0   ;;  %s619_s12 = smov 0  }
   0x6   :  { %s621_s13 = smov 0   ;;  %s623_s14 = smov 0  }
   0x7 LB: > { %s356_s15 = sadd.s32 4294967295, %s593_s14   ;;  %p358_p0 = scmp.ge.s32.totalorder %s593_s14, 1  ;;  %s593_s14 = sphi %s623_s14, %s19_s14   ;;  %s589_s13 = sphi %s621_s13, %s769_s13   ;;  %s585_s12 = sphi %s619_s12, %s768_s12   ;;  %s581_s11 = sphi %s617_s11, %s767_s11   ;;  %s577_s10 = sphi %s615_s10, %s766_s10   ;;  %s573_s9 = sphi %s613_s9, %s765_s9  }
   0x8   : > { %p645_p1 = scmp.eq.s32.totalorder %s356_s15, 0  ;;  %p127_p2 = scmp.lt.s32.totalorder %s593_s14, 3 }
   0x9   : > { %s140_s19 = sshll.u32 %s757_s1, 4  ;;  %s595_s21 = smov [#allocation5]   ;;  %s141_s19 = int_to_ptr.hbm [resolvable:$true] %s140_s19 }
   0xa   : > { %p653_p3 = pnand %p358_p0, %p127_p2  ;;  %s142_s22 = sshll.u32 %s595_s21, 4  ;;  %s143_s22 = int_to_ptr.vmem [resolvable:$true] %s142_s22 }
   0xb   : > { %p360_p6 = scmp.ge.s32.totalorder %s593_s14, 2  ;;  %s596_s23 = smov 128  }
   0xc   : > { %p380_p4 = pneg %p653_p3  ;;  %s597_s24 = smov 8  }
   0xd   : > { %s357_s25 = sadd.s32 4294967294, %s593_s14   ;;  %s38_s26 = sadd.s32 1, %s589_s13 }
   0xe   : > { %p381_p5 = pnand %p380_p4, %p645_p1  ;;  %s47_s27 = sadd.s32 1, %s581_s11 }
   0xf   : > { %p40_p7 = scmp.ge.s32.totalorder %s38_s26, 2  ;;  %p54_p8 = scmp.ne.s32.totalorder %s581_s11, %s577_s10 }
  0x10   : > { %383 = dma.hbm_to_vmem [thread:$0]  (!%p381_p5), %s141_s19, 512, %s143_s22, [#allocation6], %s596_s23, %s596_s23, %s597_s24  }
  0x11   : > { %p55_p9 = scmp.eq.s32.totalorder %s593_s14, 0  ;;  %p60_p10 = scmp.ne.s32.totalorder %s577_s10, %s573_s9 }
  0x12   : > { %s771_s26 = smov (%p40_p7, %s38_s26), 0  ;;  %p114_p13 = scmp.eq.s32.totalorder %s356_s15, 1 }
  0x13   : > { %p672_p11 = por %p55_p9, %p54_p8  ;;  %p678_p12 = por %p645_p1, %p60_p10 }
  0x14   : > { %s42_s30 = ssub.s32 %s589_s13, %s771_s26  ;;  %p120_p2 = scmp.eq.s32.totalorder %s357_s25, 1 }
  0x15   : > { %p45_p0 = scmp.eq.s32.totalorder %s42_s30, 0  ;;  %p684_p4 = por %p114_p13, %p54_p8 }
  0x16   : > { %p393_p5 = scmp.lt.s32.totalorder %s593_s14, 2  ;;  %p692_p7 = por %p120_p2, %p60_p10 }
  0x17   : > { %s690_s4 = scalar_select %p45_p0, %s581_s11, %s47_s27  }
  0x18   : > { %s156_s6 = sand.u32 1, %s581_s11   ;;  %s362_s8 = sshll.u32 %s589_s13, 3 }
  0x19   : > { %s361_s7 = sshll.u32 %s156_s6, 3  ;;  %s165_s15 = scalar_lea.hbm %s756_s0, %s362_s8 }
  0x1a   : > { %s160_s19 = scalar_lea.vmem [#allocation2], %s361_s7  ;;  %s167_s22 = sshll.u32 %s165_s15, 4  ;;  %s168_s22 = int_to_ptr.hbm [resolvable:$true] %s167_s22 }
  0x1b   : > { %s169_s21 = sshll.u32 %s160_s19, 4  ;;  %p385_p8 = pnand %p393_p5, %p672_p11  ;;  %s170_s21 = int_to_ptr.vmem [resolvable:$true] %s169_s21 }
  0x1c   : > { %s157_s23 = scalar_lea.sflag [#allocation3], %s156_s6  ;;  %178 = sbr.rel (%p653_p3) target bundleno = 173 (0xad), region = 28 }
  0x1d   : > { %387 = dma.hbm_to_vmem [thread:$0]  (!%p385_p8), %s168_s22, 128, %s170_s21, %s157_s23  }
  0x1e   : > { %s706_s24 = sand.u32 (!%p653_p3), 1, %s577_s10  }
  0x1f   : > { %s364_s25 = sshll.u32 (!%p653_p3), %s706_s24, 3  ;;  %s181_s27 = scalar_lea.sflag (!%p653_p3), [#allocation3], %s706_s24 }
  0x20   : > { %s184_s30 = scalar_lea.vmem (!%p653_p3), [#allocation2], %s364_s25 }
  0x21   : > { %560 = dma.done.wait (%p678_p12), %s181_s27, 128  }
  0x22   : > { %562 = vsyncadd (%p678_p12), %s181_s27, 4294967168 }
  0x23   : > { %564 = dma.done.wait (%p645_p1), [#allocation6], 512  }
  0x24   : > { %566 = vsyncadd (%p645_p1), [#allocation6], 4294966784  ;;  %v215_v0 = vld [vmem:[#allocation5 + $0x18] sm:$0xff]  ;;  %v214_v1 = vld [vmem:[#allocation5 + $0x10] sm:$0xff]  ;;  %vm216_vm0 = vcmask 261120   ;;  %s369_s20 = sshll.u32 %s585_s12, 3 }
  0x25   : > { %232 = vmatpush.msra.mxu0 %v215_v0  ;;  %v213_v2 = vld [vmem:[#allocation5 + $0x8] sm:$0xff]  ;;  %v212_v3 = vld [vmem:[#allocation5] sm:$0xff]  ;;  %v211_v4 = vld [vmem:[%s184_s30] sm:$0xff]  ;;  %s255_s16 = scalar_lea.hbm %s758_s2, %s369_s20  ;;  %s210_s6 = scalar_lea.vmem [#allocation7], %s364_s25  ;;  %vm240_vm1 = vcmask 785408  }
  0x26   : > { %s257_s7 = sshll.u32 %s210_s6, 4  ;;  %s259_s8 = sshll.u32 %s255_s16, 4  ;;  %s258_s7 = int_to_ptr.vmem [resolvable:$true] %s257_s7  ;;  %s260_s8 = int_to_ptr.hbm [resolvable:$true] %s259_s8 }
  0x27   : > { %233 = vmatpush.msra.mxu0 %v214_v1  ;;  %s243_s17 = scalar_lea.sflag [#allocation4], %s706_s24  ;;  %s521_s18 = sshra.s32 %s260_s8, 4  ;;  %s522_s18 = int_to_ptr.hbm [resolvable:$true] %s521_s18 }
  0x28   : > { %s523_s15 = scalar_lea.hbm %s522_s18, 8  ;;  %s527_s21 = scalar_lea.hbm %s758_s2, 16 }
  0x29   : > { %234 = vmatpush.msra.mxu0 %v213_v2  ;;  %p524_p1 = scmp.ne.s32.totalorder %s522_s18, %s523_s15  ;;  %p528_p10 = scmp.lt.s32.totalorder %s522_s18, %s758_s2 }
  0x2a   : > { %p529_p11 = scmp.lt.s32.totalorder %s527_s21, %s523_s15 }
  0x2b   : > { %235 = vmatpush.msra.mxu0 %v212_v3  ;;  %p525_p3 = pnand %p524_p1, %p684_p4 }
  0x2c   : > { %367 = vmatmul.msk.f32.vlgmr.msra.gmra.mxu0 %vm216_vm0, %v211_v4  ;;  %p530_p12 = por %p529_p11, %p528_p10 }
  0x2d   : > { %p526_p9 = pneg %p525_p3 }
  0x2f   : > { %p531_p13 = pnand %p530_p12, %p526_p9 }
  0xa9   : > { %v237_v5 = vpop.f32.mrf.mxu0 }
  0xaa   : > { %241 = vst.msk [vmem:[%s210_s6] sm:$0xff] %vm240_vm1, %v237_v5 }
  0xab   : > { %534 = shalt.err (!%p531_p13)
}
  0xac   : > { %378 = dma.vmem_to_hbm [thread:$0]  (%p684_p4), %s258_s7, 128, %s260_s8, %s243_s17  }
  0xad PF: > { %s271_s24 = sand.u32 1, %s573_s9   ;;  %p389_p0 = pnand %p360_p6, %p692_p7 }
  0xae   : > { %s272_s25 = scalar_lea.sflag [#allocation4], %s271_s24 }
  0xaf   : > { %p390_p2 = pneg %p389_p0 }
  0xb1   : > { %568 = dma.done.wait (%p390_p2), %s272_s25, 128  }
  0xb2   : > { %570 = vsyncadd (%p390_p2), %s272_s25, 4294967168  ;;  %s19_s14 = sadd.s32 1, %s593_s14   ;;  %s765_s9 = smov %s577_s10 }
  0xb3   : > { %p16_p5 = scmp.ge.s32.totalorder %s19_s14, 4   ;;  %s766_s10 = smov %s581_s11 }
  0xb4   : > { %s767_s11 = smov %s690_s4  ;;  %s768_s12 = smov %s589_s13 }
  0xb5   : > { %s769_s13 = smov %s771_s26  ;;  %18 = sbr.rel (!%p16_p5) target bundleno = 7 (0x7), region = 78 }
  0xba   :  { %278 = vsyncpa [#allocation3], 1 }
  0xbb   :  { %280 = vsyncpa [#allocation3 + $0x1], 1 }
  0xbc   :  { %281 = vsyncpa [#allocation6], 1 }
  0xbd   :  { %282 = vsyncpa [#allocation4], 1 }
  0xbe   :  { %284 = vsyncpa [#allocation4 + $0x1], 1 }

</bundles_post_ra>
